<compile_context>
chip_gen: v7x
topology: tpu7x:2x2x1
jax: 0.10.0
libtpu: 0.0.40
codegen_flags: <defaults>
</compile_context>

<pallas_src>
import functools

import jax
import jax.numpy as jnp
import numpy as np
from jax.experimental import pallas as pl
from jax.experimental.pallas import tpu as pltpu

EPS = 1e-5


def _make_kernel(N, C, H, W, K, dil):
    NC, HW = N * C, H * W
    KK = K * K
    # Padded flat buffer: real data at [OFF, OFF+HW); every shifted tap reads
    # inside [OFF - margin, OFF + HW + margin), which must be in-bounds and
    # zero outside the real block (that is the conv's vertical zero padding).
    margin = dil * (W + 1)                      # max |dy*W + dx| = dil*W + dil
    OFF = ((margin + 63) // 64) * 64            # 64 is enough; 128-align buys nothing
    LPAD = OFF + HW + OFF

    def kernel(x_ref, w_ref, misc_ref, o_ref, xpad_ref, mpad_ref):
        f32 = jnp.float32

        # ---- hoisted constants: W-edge masks (built once, reused 2x) --------
        col = jax.lax.broadcasted_iota(jnp.int32, (NC, HW), 1) % W
        mask_l = col >= dil                     # valid lanes when dx = -dil
        mask_r = col < (W - dil)                # valid lanes when dx = +dil

        pool = misc_ref[:, :NC]                 # (NC,NC): 1/(N*HW) on same-channel rows
        g1 = misc_ref[:, NC + 0:NC + 1]
        b1 = misc_ref[:, NC + 1:NC + 2]
        g2 = misc_ref[:, NC + 2:NC + 3]
        b2 = misc_ref[:, NC + 3:NC + 4]

        # ---- zero only the halo margins of the padded scratches -------------
        zmargin = jnp.zeros((NC, OFF), f32)
        xpad_ref[:, :OFF] = zmargin
        xpad_ref[:, OFF + HW:] = zmargin
        mpad_ref[:, :OFF] = zmargin
        mpad_ref[:, OFF + HW:] = zmargin

        xv = x_ref[...]                          # (NC, HW), kept for residual
        xpad_ref[:, OFF:OFF + HW] = xv           # one dense interior store

        def dilated_conv(src_ref, conv_idx):
            """9-tap dilated conv: shift-and-mask slices, per-tap MXU matmul
            with a block-diagonal (NC,NC) channel-mixing matrix."""
            acc = jnp.zeros((NC, HW), f32)
            tap = 0
            for kh in range(K):
                for kw in range(K):
                    dy = (kh - K // 2) * dil
                    dx = (kw - K // 2) * dil
                    s = dy * W + dx
                    sl = src_ref[:, OFF + s: OFF + s + HW]     # (NC, HW)
                    if dx < 0:
                        sl = jnp.where(mask_l, sl, 0.0)
                    elif dx > 0:
                        sl = jnp.where(mask_r, sl, 0.0)
                    acc = acc + jnp.dot(w_ref[conv_idx * KK + tap], sl,
                                        preferred_element_type=f32)
                    tap += 1
            return acc

        def batchnorm(acc, gamma_col, beta_col):
            # Per-channel batch stats (over N and HW) via the pool matmul;
            # two-pass variance for numerical robustness.
            mean = jnp.sum(jnp.dot(pool, acc, preferred_element_type=f32),
                           axis=1, keepdims=True)              # (NC,1)
            diff = acc - mean
            var = jnp.sum(jnp.dot(pool, diff * diff, preferred_element_type=f32),
                          axis=1, keepdims=True)               # (NC,1), biased
            inv = jax.lax.rsqrt(var + EPS)
            scale = gamma_col * inv
            shift = beta_col - mean * scale
            return acc * scale + shift

        # ---- stage 1: out1 = relu(bn1(conv1(x))), kept resident in VMEM -----
        acc1 = dilated_conv(xpad_ref, 0)
        y1 = jnp.maximum(batchnorm(acc1, g1, b1), 0.0)
        mpad_ref[:, OFF:OFF + HW] = y1           # one dense interior store

        # ---- stage 2: out = relu(bn2(conv2(out1)) + x) -----------------------
        acc2 = dilated_conv(mpad_ref, 1)
        y2 = batchnorm(acc2, g2, b2) + xv
        o_ref[...] = jnp.maximum(y2, 0.0)        # one dense (NC,HW) store

    return kernel, LPAD


@functools.partial(jax.jit, static_argnames=("kernel_size", "dilation"))
def residual_block_with_dilation(x_nchw, params, *, kernel_size=3, dilation=3):
    """Forward of ResidualBlockWithDilation (stride=1, is_top=False, no downsample)."""
    N, C, H, W = x_nchw.shape
    NC, HW = N * C, H * W
    K = kernel_size
    kernel, LPAD = _make_kernel(N, C, H, W, K, dilation)

    x_flat = x_nchw.reshape(NC, HW)              # free reshape: N*C on sublanes

    # Per-tap block-diagonal channel-mixing matrices, built once in the wrapper
    # (tiny): M_tap[n*C+co, m*C+ci] = w[co, ci, kh, kw] iff n == m.
    def tap_mats(w):
        co, ci = w.shape[0], w.shape[1]
        wt = jnp.transpose(w, (2, 3, 0, 1)).reshape(K * K, co, ci)
        eye = jnp.eye(N, dtype=w.dtype)
        return jnp.einsum("tij,nm->tnimj", wt, eye).reshape(K * K, N * co, N * ci)

    w_all = jnp.concatenate([tap_mats(params["w1"]), tap_mats(params["w2"])],
                            axis=0).astype(jnp.float32)        # (2*K*K, NC, NC)

    # Conv biases b1/b2 intentionally NOT passed: a per-channel constant is
    # exactly cancelled by the following training-mode BatchNorm.

    # misc slab: [pool | gamma1 beta1 gamma2 beta2] columns, shape (NC, NC+4).
    ch = jnp.arange(NC) % C
    pool = jnp.where(ch[:, None] == ch[None, :], 1.0 / (N * HW), 0.0)
    cols = jnp.stack([jnp.tile(params["gamma1"], N), jnp.tile(params["beta1"], N),
                      jnp.tile(params["gamma2"], N), jnp.tile(params["beta2"], N)],
                     axis=1)
    misc = jnp.concatenate([pool, cols], axis=1).astype(jnp.float32)

    vmem = pl.BlockSpec(memory_space=pltpu.MemorySpace.VMEM)

    out_flat = pl.pallas_call(
        kernel,
        out_shape=jax.ShapeDtypeStruct((NC, HW), jnp.float32),
        in_specs=[vmem, vmem, vmem],
        out_specs=vmem,
        scratch_shapes=[pltpu.VMEM((NC, LPAD), jnp.float32),   # padded x
                        pltpu.VMEM((NC, LPAD), jnp.float32)],  # padded out1
    )(x_flat, w_all, misc)

    return out_flat.reshape(N, C, H, W)


def _reference_forward(x, params, *, kernel_size=3, dilation=3):
    """Pure-JAX reference with identical math (NCHW / OIHW), incl. conv biases."""
    pad = dilation * (kernel_size // 2)

    def conv(inp, w, b):
        y = jax.lax.conv_general_dilated(
            inp, w, window_strides=(1, 1),
            padding=((pad, pad), (pad, pad)),
            rhs_dilation=(dilation, dilation),
            dimension_numbers=("NCHW", "OIHW", "NCHW"))
        return y + b.reshape(1, -1, 1, 1)

    def bn(y, g, be):
        mean = jnp.mean(y, axis=(0, 2, 3), keepdims=True)
        var = jnp.mean((y - mean) ** 2, axis=(0, 2, 3), keepdims=True)
        return ((y - mean) * jax.lax.rsqrt(var + EPS) * g.reshape(1, -1, 1, 1)
                + be.reshape(1, -1, 1, 1))

    out1 = jnp.maximum(bn(conv(x, params["w1"], params["b1"]),
                          params["gamma1"], params["beta1"]), 0.0)
    out2 = bn(conv(out1, params["w2"], params["b2"]),
              params["gamma2"], params["beta2"]) + x
    return jnp.maximum(out2, 0.0)


if __name__ == "__main__":
    # Small shapes: batch=2, in_channels=out_channels=4, spatial=16x16.
    N, C, H, W = 2, 4, 16, 16
    K = 3

    key = jax.random.PRNGKey(0)
    ks = jax.random.split(key, 9)
    scale = 1.0 / np.sqrt(C * K * K)
    params = {
        "w1": jax.random.uniform(ks[0], (C, C, K, K), jnp.float32, -scale, scale),
        "b1": jax.random.uniform(ks[1], (C,), jnp.float32, -scale, scale),
        "gamma1": jnp.ones((C,), jnp.float32),
        "beta1": jnp.zeros((C,), jnp.float32),
        "w2": jax.random.uniform(ks[2], (C, C, K, K), jnp.float32, -scale, scale),
        "b2": jax.random.uniform(ks[3], (C,), jnp.float32, -scale, scale),
        "gamma2": jax.random.uniform(ks[4], (C,), jnp.float32, 0.5, 1.5),
        "beta2": jax.random.uniform(ks[5], (C,), jnp.float32, -0.1, 0.1),
    }
    x = jax.random.normal(ks[6], (N, C, H, W), jnp.float32)

    out = jax.block_until_ready(residual_block_with_dilation(x, params))
    ref = jax.block_until_ready(_reference_forward(x, params))

    if not np.allclose(np.asarray(out), np.asarray(ref), rtol=1e-3, atol=1e-3):
        raise AssertionError("Pallas kernel output does not match reference")

    print("KERNEL_OK")
</pallas_src>

<mosaic_0001>
module attributes {stable_mosaic.version = 11 : i64} {
  func.func @kernel(%arg0: memref<8x256xf32, #tpu.memory_space<vmem>>, %arg1: memref<18x8x8xf32, #tpu.memory_space<vmem>>, %arg2: memref<8x12xf32, #tpu.memory_space<vmem>>, %arg3: memref<8x256xf32, #tpu.memory_space<vmem>>, %arg4: memref<8x384xf32, #tpu.memory_space<vmem>>, %arg5: memref<8x384xf32, #tpu.memory_space<vmem>>) attributes {dimension_semantics = [], scalar_prefetch = 0 : i64, scratch_operands = 2 : i64, tpu.core_type = #tpu.core_type<tc>} {
    %0 = tpu.iota {dimensions = array<i32: 1>} : vector<8x256xi32>
    %c16_i32 = arith.constant 16 : i32
    %c0_i32 = arith.constant 0 : i32
    %1 = arith.cmpi eq, %c16_i32, %c0_i32 : i32
    %c1_i32 = arith.constant 1 : i32
    %2 = arith.select %1, %c1_i32, %c16_i32 : i32
    %3 = vector.broadcast %2 : i32 to vector<8x256xi32>
    %4 = arith.remsi %0, %3 : vector<8x256xi32>
    %c0_i32_0 = arith.constant 0 : i32
    %5 = vector.broadcast %c0_i32_0 : i32 to vector<8x256xi32>
    %6 = arith.cmpi ne, %4, %5 : vector<8x256xi32>
    %c0_i32_1 = arith.constant 0 : i32
    %7 = vector.broadcast %c0_i32_1 : i32 to vector<8x256xi32>
    %8 = arith.cmpi slt, %4, %7 : vector<8x256xi32>
    %c0_i32_2 = arith.constant 0 : i32
    %9 = arith.cmpi slt, %2, %c0_i32_2 : i32
    %10 = vector.broadcast %9 : i1 to vector<8x256xi1>
    %11 = vector.broadcast %10 : vector<8x256xi1> to vector<8x256xi1>
    %12 = arith.xori %8, %11 : vector<8x256xi1>
    %13 = arith.andi %12, %6 : vector<8x256xi1>
    %14 = vector.broadcast %2 : i32 to vector<8x256xi32>
    %15 = arith.addi %4, %14 : vector<8x256xi32>
    %16 = arith.select %13, %15, %4 : vector<8x256xi1>, vector<8x256xi32>
    %c3_i32 = arith.constant 3 : i32
    %17 = vector.broadcast %c3_i32 : i32 to vector<8x256xi32>
    %18 = arith.cmpi sge, %16, %17 : vector<8x256xi32>
    %c13_i32 = arith.constant 13 : i32
    %19 = vector.broadcast %c13_i32 : i32 to vector<8x256xi32>
    %20 = arith.cmpi slt, %16, %19 : vector<8x256xi32>
    %c0 = arith.constant 0 : index
    %c0_3 = arith.constant 0 : index
    %21 = vector.load %arg2[%c0, %c0_3] : memref<8x12xf32, #tpu.memory_space<vmem>>, vector<8x8xf32>
    %c0_4 = arith.constant 0 : index
    %c8 = arith.constant 8 : index
    %22 = vector.load %arg2[%c0_4, %c8] : memref<8x12xf32, #tpu.memory_space<vmem>>, vector<8x1xf32>
    %c0_5 = arith.constant 0 : index
    %c9 = arith.constant 9 : index
    %23 = vector.load %arg2[%c0_5, %c9] : memref<8x12xf32, #tpu.memory_space<vmem>>, vector<8x1xf32>
    %c0_6 = arith.constant 0 : index
    %c10 = arith.constant 10 : index
    %24 = vector.load %arg2[%c0_6, %c10] : memref<8x12xf32, #tpu.memory_space<vmem>>, vector<8x1xf32>
    %c0_7 = arith.constant 0 : index
    %c11 = arith.constant 11 : index
    %25 = vector.load %arg2[%c0_7, %c11] : memref<8x12xf32, #tpu.memory_space<vmem>>, vector<8x1xf32>
    %cst = arith.constant 0.000000e+00 : f32
    %26 = vector.broadcast %cst : f32 to vector<8x64xf32>
    %c0_8 = arith.constant 0 : index
    %c0_9 = arith.constant 0 : index
    %27 = vector.load %arg4[%c0_8, %c0_9] : memref<8x384xf32, #tpu.memory_space<vmem>>, vector<8x64xf32>
    tpu.vector_store %arg4[%c0_8, %c0_9], %26 {strides = array<i32>} : memref<8x384xf32, #tpu.memory_space<vmem>>, vector<8x64xf32>,
    %c0_10 = arith.constant 0 : index
    %c320 = arith.constant 320 : index
    %28 = vector.load %arg4[%c0_10, %c320] : memref<8x384xf32, #tpu.memory_space<vmem>>, vector<8x64xf32>
    tpu.vector_store %arg4[%c0_10, %c320], %26 {strides = array<i32>} : memref<8x384xf32, #tpu.memory_space<vmem>>, vector<8x64xf32>,
    %c0_11 = arith.constant 0 : index
    %c0_12 = arith.constant 0 : index
    %29 = vector.load %arg5[%c0_11, %c0_12] : memref<8x384xf32, #tpu.memory_space<vmem>>, vector<8x64xf32>
    tpu.vector_store %arg5[%c0_11, %c0_12], %26 {strides = array<i32>} : memref<8x384xf32, #tpu.memory_space<vmem>>, vector<8x64xf32>,
    %c0_13 = arith.constant 0 : index
    %c320_14 = arith.constant 320 : index
    %30 = vector.load %arg5[%c0_13, %c320_14] : memref<8x384xf32, #tpu.memory_space<vmem>>, vector<8x64xf32>
    tpu.vector_store %arg5[%c0_13, %c320_14], %26 {strides = array<i32>} : memref<8x384xf32, #tpu.memory_space<vmem>>, vector<8x64xf32>,
    %c0_15 = arith.constant 0 : index
    %c0_16 = arith.constant 0 : index
    %31 = vector.load %arg0[%c0_15, %c0_16] : memref<8x256xf32, #tpu.memory_space<vmem>>, vector<8x256xf32>
    %c0_17 = arith.constant 0 : index
    %c64 = arith.constant 64 : index
    %32 = vector.load %arg4[%c0_17, %c64] : memref<8x384xf32, #tpu.memory_space<vmem>>, vector<8x256xf32>
    tpu.vector_store %arg4[%c0_17, %c64], %31 {strides = array<i32>} : memref<8x384xf32, #tpu.memory_space<vmem>>, vector<8x256xf32>,
    %cst_18 = arith.constant 0.000000e+00 : f32
    %33 = vector.broadcast %cst_18 : f32 to vector<8x256xf32>
    %c0_19 = arith.constant 0 : index
    %c13 = arith.constant 13 : index
    %34 = vector.load %arg4[%c0_19, %c13] : memref<8x384xf32, #tpu.memory_space<vmem>>, vector<8x256xf32>
    %cst_20 = arith.constant 0.000000e+00 : f32
    %35 = vector.broadcast %cst_20 : f32 to vector<8x256xf32>
    %36 = arith.select %18, %34, %35 : vector<8x256xi1>, vector<8x256xf32>
    %c0_21 = arith.constant 0 : index
    %c0_22 = arith.constant 0 : index
    %c0_23 = arith.constant 0 : index
    %37 = vector.load %arg1[%c0_21, %c0_22, %c0_23] : memref<18x8x8xf32, #tpu.memory_space<vmem>>, vector<1x8x8xf32>
    %38 = vector.shape_cast %37 : vector<1x8x8xf32> to vector<8x8xf32>
    %cst_24 = arith.constant dense<0.000000e+00> : vector<8x256xf32>
    %39 = tpu.matmul %38, %36, %cst_24 {dimension_numbers = #tpu.dot_dimension_numbers<[1], [0], [0], [1], [0, 0, 1, 1], [], []>} : vector<8x8xf32>, vector<8x256xf32>, vector<8x256xf32> -> vector<8x256xf32>
    %40 = arith.addf %33, %39 : vector<8x256xf32>
    %c0_25 = arith.constant 0 : index
    %c16 = arith.constant 16 : index
    %41 = vector.load %arg4[%c0_25, %c16] : memref<8x384xf32, #tpu.memory_space<vmem>>, vector<8x256xf32>
    %c1 = arith.constant 1 : index
    %c0_26 = arith.constant 0 : index
    %c0_27 = arith.constant 0 : index
    %42 = vector.load %arg1[%c1, %c0_26, %c0_27] : memref<18x8x8xf32, #tpu.memory_space<vmem>>, vector<1x8x8xf32>
    %43 = vector.shape_cast %42 : vector<1x8x8xf32> to vector<8x8xf32>
    %cst_28 = arith.constant dense<0.000000e+00> : vector<8x256xf32>
    %44 = tpu.matmul %43, %41, %cst_28 {dimension_numbers = #tpu.dot_dimension_numbers<[1], [0], [0], [1], [0, 0, 1, 1], [], []>} : vector<8x8xf32>, vector<8x256xf32>, vector<8x256xf32> -> vector<8x256xf32>
    %45 = arith.addf %40, %44 : vector<8x256xf32>
    %c0_29 = arith.constant 0 : index
    %c19 = arith.constant 19 : index
    %46 = vector.load %arg4[%c0_29, %c19] : memref<8x384xf32, #tpu.memory_space<vmem>>, vector<8x256xf32>
    %cst_30 = arith.constant 0.000000e+00 : f32
    %47 = vector.broadcast %cst_30 : f32 to vector<8x256xf32>
    %48 = arith.select %20, %46, %47 : vector<8x256xi1>, vector<8x256xf32>
    %c2 = arith.constant 2 : index
    %c0_31 = arith.constant 0 : index
    %c0_32 = arith.constant 0 : index
    %49 = vector.load %arg1[%c2, %c0_31, %c0_32] : memref<18x8x8xf32, #tpu.memory_space<vmem>>, vector<1x8x8xf32>
    %50 = vector.shape_cast %49 : vector<1x8x8xf32> to vector<8x8xf32>
    %cst_33 = arith.constant dense<0.000000e+00> : vector<8x256xf32>
    %51 = tpu.matmul %50, %48, %cst_33 {dimension_numbers = #tpu.dot_dimension_numbers<[1], [0], [0], [1], [0, 0, 1, 1], [], []>} : vector<8x8xf32>, vector<8x256xf32>, vector<8x256xf32> -> vector<8x256xf32>
    %52 = arith.addf %45, %51 : vector<8x256xf32>
    %c0_34 = arith.constant 0 : index
    %c61 = arith.constant 61 : index
    %53 = vector.load %arg4[%c0_34, %c61] : memref<8x384xf32, #tpu.memory_space<vmem>>, vector<8x256xf32>
    %cst_35 = arith.constant 0.000000e+00 : f32
    %54 = vector.broadcast %cst_35 : f32 to vector<8x256xf32>
    %55 = arith.select %18, %53, %54 : vector<8x256xi1>, vector<8x256xf32>
    %c3 = arith.constant 3 : index
    %c0_36 = arith.constant 0 : index
    %c0_37 = arith.constant 0 : index
    %56 = vector.load %arg1[%c3, %c0_36, %c0_37] : memref<18x8x8xf32, #tpu.memory_space<vmem>>, vector<1x8x8xf32>
    %57 = vector.shape_cast %56 : vector<1x8x8xf32> to vector<8x8xf32>
    %cst_38 = arith.constant dense<0.000000e+00> : vector<8x256xf32>
    %58 = tpu.matmul %57, %55, %cst_38 {dimension_numbers = #tpu.dot_dimension_numbers<[1], [0], [0], [1], [0, 0, 1, 1], [], []>} : vector<8x8xf32>, vector<8x256xf32>, vector<8x256xf32> -> vector<8x256xf32>
    %59 = arith.addf %52, %58 : vector<8x256xf32>
    %c0_39 = arith.constant 0 : index
    %c64_40 = arith.constant 64 : index
    %60 = vector.load %arg4[%c0_39, %c64_40] : memref<8x384xf32, #tpu.memory_space<vmem>>, vector<8x256xf32>
    %c4 = arith.constant 4 : index
    %c0_41 = arith.constant 0 : index
    %c0_42 = arith.constant 0 : index
    %61 = vector.load %arg1[%c4, %c0_41, %c0_42] : memref<18x8x8xf32, #tpu.memory_space<vmem>>, vector<1x8x8xf32>
    %62 = vector.shape_cast %61 : vector<1x8x8xf32> to vector<8x8xf32>
    %cst_43 = arith.constant dense<0.000000e+00> : vector<8x256xf32>
    %63 = tpu.matmul %62, %60, %cst_43 {dimension_numbers = #tpu.dot_dimension_numbers<[1], [0], [0], [1], [0, 0, 1, 1], [], []>} : vector<8x8xf32>, vector<8x256xf32>, vector<8x256xf32> -> vector<8x256xf32>
    %64 = arith.addf %59, %63 : vector<8x256xf32>
    %c0_44 = arith.constant 0 : index
    %c67 = arith.constant 67 : index
    %65 = vector.load %arg4[%c0_44, %c67] : memref<8x384xf32, #tpu.memory_space<vmem>>, vector<8x256xf32>
    %cst_45 = arith.constant 0.000000e+00 : f32
    %66 = vector.broadcast %cst_45 : f32 to vector<8x256xf32>
    %67 = arith.select %20, %65, %66 : vector<8x256xi1>, vector<8x256xf32>
    %c5 = arith.constant 5 : index
    %c0_46 = arith.constant 0 : index
    %c0_47 = arith.constant 0 : index
    %68 = vector.load %arg1[%c5, %c0_46, %c0_47] : memref<18x8x8xf32, #tpu.memory_space<vmem>>, vector<1x8x8xf32>
    %69 = vector.shape_cast %68 : vector<1x8x8xf32> to vector<8x8xf32>
    %cst_48 = arith.constant dense<0.000000e+00> : vector<8x256xf32>
    %70 = tpu.matmul %69, %67, %cst_48 {dimension_numbers = #tpu.dot_dimension_numbers<[1], [0], [0], [1], [0, 0, 1, 1], [], []>} : vector<8x8xf32>, vector<8x256xf32>, vector<8x256xf32> -> vector<8x256xf32>
    %71 = arith.addf %64, %70 : vector<8x256xf32>
    %c0_49 = arith.constant 0 : index
    %c109 = arith.constant 109 : index
    %72 = vector.load %arg4[%c0_49, %c109] : memref<8x384xf32, #tpu.memory_space<vmem>>, vector<8x256xf32>
    %cst_50 = arith.constant 0.000000e+00 : f32
    %73 = vector.broadcast %cst_50 : f32 to vector<8x256xf32>
    %74 = arith.select %18, %72, %73 : vector<8x256xi1>, vector<8x256xf32>
    %c6 = arith.constant 6 : index
    %c0_51 = arith.constant 0 : index
    %c0_52 = arith.constant 0 : index
    %75 = vector.load %arg1[%c6, %c0_51, %c0_52] : memref<18x8x8xf32, #tpu.memory_space<vmem>>, vector<1x8x8xf32>
    %76 = vector.shape_cast %75 : vector<1x8x8xf32> to vector<8x8xf32>
    %cst_53 = arith.constant dense<0.000000e+00> : vector<8x256xf32>
    %77 = tpu.matmul %76, %74, %cst_53 {dimension_numbers = #tpu.dot_dimension_numbers<[1], [0], [0], [1], [0, 0, 1, 1], [], []>} : vector<8x8xf32>, vector<8x256xf32>, vector<8x256xf32> -> vector<8x256xf32>
    %78 = arith.addf %71, %77 : vector<8x256xf32>
    %c0_54 = arith.constant 0 : index
    %c112 = arith.constant 112 : index
    %79 = vector.load %arg4[%c0_54, %c112] : memref<8x384xf32, #tpu.memory_space<vmem>>, vector<8x256xf32>
    %c7 = arith.constant 7 : index
    %c0_55 = arith.constant 0 : index
    %c0_56 = arith.constant 0 : index
    %80 = vector.load %arg1[%c7, %c0_55, %c0_56] : memref<18x8x8xf32, #tpu.memory_space<vmem>>, vector<1x8x8xf32>
    %81 = vector.shape_cast %80 : vector<1x8x8xf32> to vector<8x8xf32>
    %cst_57 = arith.constant dense<0.000000e+00> : vector<8x256xf32>
    %82 = tpu.matmul %81, %79, %cst_57 {dimension_numbers = #tpu.dot_dimension_numbers<[1], [0], [0], [1], [0, 0, 1, 1], [], []>} : vector<8x8xf32>, vector<8x256xf32>, vector<8x256xf32> -> vector<8x256xf32>
    %83 = arith.addf %78, %82 : vector<8x256xf32>
    %c0_58 = arith.constant 0 : index
    %c115 = arith.constant 115 : index
    %84 = vector.load %arg4[%c0_58, %c115] : memref<8x384xf32, #tpu.memory_space<vmem>>, vector<8x256xf32>
    %cst_59 = arith.constant 0.000000e+00 : f32
    %85 = vector.broadcast %cst_59 : f32 to vector<8x256xf32>
    %86 = arith.select %20, %84, %85 : vector<8x256xi1>, vector<8x256xf32>
    %c8_60 = arith.constant 8 : index
    %c0_61 = arith.constant 0 : index
    %c0_62 = arith.constant 0 : index
    %87 = vector.load %arg1[%c8_60, %c0_61, %c0_62] : memref<18x8x8xf32, #tpu.memory_space<vmem>>, vector<1x8x8xf32>
    %88 = vector.shape_cast %87 : vector<1x8x8xf32> to vector<8x8xf32>
    %cst_63 = arith.constant dense<0.000000e+00> : vector<8x256xf32>
    %89 = tpu.matmul %88, %86, %cst_63 {dimension_numbers = #tpu.dot_dimension_numbers<[1], [0], [0], [1], [0, 0, 1, 1], [], []>} : vector<8x8xf32>, vector<8x256xf32>, vector<8x256xf32> -> vector<8x256xf32>
    %90 = arith.addf %83, %89 : vector<8x256xf32>
    %cst_64 = arith.constant dense<0.000000e+00> : vector<8x256xf32>
    %91 = tpu.matmul %21, %90, %cst_64 {dimension_numbers = #tpu.dot_dimension_numbers<[1], [0], [0], [1], [0, 0, 1, 1], [], []>} : vector<8x8xf32>, vector<8x256xf32>, vector<8x256xf32> -> vector<8x256xf32>
    %cst_65 = arith.constant dense<0.000000e+00> : vector<8xf32>
    %92 = vector.multi_reduction <add>, %91, %cst_65 [1] : vector<8x256xf32> to vector<8xf32>
    %93 = vector.shape_cast %92 : vector<8xf32> to vector<8x1xf32>
    %94 = vector.broadcast %93 : vector<8x1xf32> to vector<8x256xf32>
    %95 = arith.subf %90, %94 : vector<8x256xf32>
    %96 = arith.mulf %95, %95 : vector<8x256xf32>
    %cst_66 = arith.constant dense<0.000000e+00> : vector<8x256xf32>
    %97 = tpu.matmul %21, %96, %cst_66 {dimension_numbers = #tpu.dot_dimension_numbers<[1], [0], [0], [1], [0, 0, 1, 1], [], []>} : vector<8x8xf32>, vector<8x256xf32>, vector<8x256xf32> -> vector<8x256xf32>
    %cst_67 = arith.constant dense<0.000000e+00> : vector<8xf32>
    %98 = vector.multi_reduction <add>, %97, %cst_67 [1] : vector<8x256xf32> to vector<8xf32>
    %99 = vector.shape_cast %98 : vector<8xf32> to vector<8x1xf32>
    %cst_68 = arith.constant 9.99999974E-6 : f32
    %100 = vector.broadcast %cst_68 : f32 to vector<8x1xf32>
    %101 = arith.addf %99, %100 : vector<8x1xf32>
    %102 = math.rsqrt %101 : vector<8x1xf32>
    %103 = arith.mulf %22, %102 : vector<8x1xf32>
    %104 = arith.mulf %93, %103 : vector<8x1xf32>
    %105 = arith.subf %23, %104 : vector<8x1xf32>
    %106 = vector.broadcast %103 : vector<8x1xf32> to vector<8x256xf32>
    %107 = arith.mulf %90, %106 : vector<8x256xf32>
    %108 = vector.broadcast %105 : vector<8x1xf32> to vector<8x256xf32>
    %109 = arith.addf %107, %108 : vector<8x256xf32>
    %cst_69 = arith.constant 0.000000e+00 : f32
    %110 = vector.broadcast %cst_69 : f32 to vector<8x256xf32>
    %111 = arith.maximumf %109, %110 : vector<8x256xf32>
    %c0_70 = arith.constant 0 : index
    %c64_71 = arith.constant 64 : index
    %112 = vector.load %arg5[%c0_70, %c64_71] : memref<8x384xf32, #tpu.memory_space<vmem>>, vector<8x256xf32>
    tpu.vector_store %arg5[%c0_70, %c64_71], %111 {strides = array<i32>} : memref<8x384xf32, #tpu.memory_space<vmem>>, vector<8x256xf32>,
    %cst_72 = arith.constant 0.000000e+00 : f32
    %113 = vector.broadcast %cst_72 : f32 to vector<8x256xf32>
    %c0_73 = arith.constant 0 : index
    %c13_74 = arith.constant 13 : index
    %114 = vector.load %arg5[%c0_73, %c13_74] : memref<8x384xf32, #tpu.memory_space<vmem>>, vector<8x256xf32>
    %cst_75 = arith.constant 0.000000e+00 : f32
    %115 = vector.broadcast %cst_75 : f32 to vector<8x256xf32>
    %116 = arith.select %18, %114, %115 : vector<8x256xi1>, vector<8x256xf32>
    %c9_76 = arith.constant 9 : index
    %c0_77 = arith.constant 0 : index
    %c0_78 = arith.constant 0 : index
    %117 = vector.load %arg1[%c9_76, %c0_77, %c0_78] : memref<18x8x8xf32, #tpu.memory_space<vmem>>, vector<1x8x8xf32>
    %118 = vector.shape_cast %117 : vector<1x8x8xf32> to vector<8x8xf32>
    %cst_79 = arith.constant dense<0.000000e+00> : vector<8x256xf32>
    %119 = tpu.matmul %118, %116, %cst_79 {dimension_numbers = #tpu.dot_dimension_numbers<[1], [0], [0], [1], [0, 0, 1, 1], [], []>} : vector<8x8xf32>, vector<8x256xf32>, vector<8x256xf32> -> vector<8x256xf32>
    %120 = arith.addf %113, %119 : vector<8x256xf32>
    %c0_80 = arith.constant 0 : index
    %c16_81 = arith.constant 16 : index
    %121 = vector.load %arg5[%c0_80, %c16_81] : memref<8x384xf32, #tpu.memory_space<vmem>>, vector<8x256xf32>
    %c10_82 = arith.constant 10 : index
    %c0_83 = arith.constant 0 : index
    %c0_84 = arith.constant 0 : index
    %122 = vector.load %arg1[%c10_82, %c0_83, %c0_84] : memref<18x8x8xf32, #tpu.memory_space<vmem>>, vector<1x8x8xf32>
    %123 = vector.shape_cast %122 : vector<1x8x8xf32> to vector<8x8xf32>
    %cst_85 = arith.constant dense<0.000000e+00> : vector<8x256xf32>
    %124 = tpu.matmul %123, %121, %cst_85 {dimension_numbers = #tpu.dot_dimension_numbers<[1], [0], [0], [1], [0, 0, 1, 1], [], []>} : vector<8x8xf32>, vector<8x256xf32>, vector<8x256xf32> -> vector<8x256xf32>
    %125 = arith.addf %120, %124 : vector<8x256xf32>
    %c0_86 = arith.constant 0 : index
    %c19_87 = arith.constant 19 : index
    %126 = vector.load %arg5[%c0_86, %c19_87] : memref<8x384xf32, #tpu.memory_space<vmem>>, vector<8x256xf32>
    %cst_88 = arith.constant 0.000000e+00 : f32
    %127 = vector.broadcast %cst_88 : f32 to vector<8x256xf32>
    %128 = arith.select %20, %126, %127 : vector<8x256xi1>, vector<8x256xf32>
    %c11_89 = arith.constant 11 : index
    %c0_90 = arith.constant 0 : index
    %c0_91 = arith.constant 0 : index
    %129 = vector.load %arg1[%c11_89, %c0_90, %c0_91] : memref<18x8x8xf32, #tpu.memory_space<vmem>>, vector<1x8x8xf32>
    %130 = vector.shape_cast %129 : vector<1x8x8xf32> to vector<8x8xf32>
    %cst_92 = arith.constant dense<0.000000e+00> : vector<8x256xf32>
    %131 = tpu.matmul %130, %128, %cst_92 {dimension_numbers = #tpu.dot_dimension_numbers<[1], [0], [0], [1], [0, 0, 1, 1], [], []>} : vector<8x8xf32>, vector<8x256xf32>, vector<8x256xf32> -> vector<8x256xf32>
    %132 = arith.addf %125, %131 : vector<8x256xf32>
    %c0_93 = arith.constant 0 : index
    %c61_94 = arith.constant 61 : index
    %133 = vector.load %arg5[%c0_93, %c61_94] : memref<8x384xf32, #tpu.memory_space<vmem>>, vector<8x256xf32>
    %cst_95 = arith.constant 0.000000e+00 : f32
    %134 = vector.broadcast %cst_95 : f32 to vector<8x256xf32>
    %135 = arith.select %18, %133, %134 : vector<8x256xi1>, vector<8x256xf32>
    %c12 = arith.constant 12 : index
    %c0_96 = arith.constant 0 : index
    %c0_97 = arith.constant 0 : index
    %136 = vector.load %arg1[%c12, %c0_96, %c0_97] : memref<18x8x8xf32, #tpu.memory_space<vmem>>, vector<1x8x8xf32>
    %137 = vector.shape_cast %136 : vector<1x8x8xf32> to vector<8x8xf32>
    %cst_98 = arith.constant dense<0.000000e+00> : vector<8x256xf32>
    %138 = tpu.matmul %137, %135, %cst_98 {dimension_numbers = #tpu.dot_dimension_numbers<[1], [0], [0], [1], [0, 0, 1, 1], [], []>} : vector<8x8xf32>, vector<8x256xf32>, vector<8x256xf32> -> vector<8x256xf32>
    %139 = arith.addf %132, %138 : vector<8x256xf32>
    %c0_99 = arith.constant 0 : index
    %c64_100 = arith.constant 64 : index
    %140 = vector.load %arg5[%c0_99, %c64_100] : memref<8x384xf32, #tpu.memory_space<vmem>>, vector<8x256xf32>
    %c13_101 = arith.constant 13 : index
    %c0_102 = arith.constant 0 : index
    %c0_103 = arith.constant 0 : index
    %141 = vector.load %arg1[%c13_101, %c0_102, %c0_103] : memref<18x8x8xf32, #tpu.memory_space<vmem>>, vector<1x8x8xf32>
    %142 = vector.shape_cast %141 : vector<1x8x8xf32> to vector<8x8xf32>
    %cst_104 = arith.constant dense<0.000000e+00> : vector<8x256xf32>
    %143 = tpu.matmul %142, %140, %cst_104 {dimension_numbers = #tpu.dot_dimension_numbers<[1], [0], [0], [1], [0, 0, 1, 1], [], []>} : vector<8x8xf32>, vector<8x256xf32>, vector<8x256xf32> -> vector<8x256xf32>
    %144 = arith.addf %139, %143 : vector<8x256xf32>
    %c0_105 = arith.constant 0 : index
    %c67_106 = arith.constant 67 : index
    %145 = vector.load %arg5[%c0_105, %c67_106] : memref<8x384xf32, #tpu.memory_space<vmem>>, vector<8x256xf32>
    %cst_107 = arith.constant 0.000000e+00 : f32
    %146 = vector.broadcast %cst_107 : f32 to vector<8x256xf32>
    %147 = arith.select %20, %145, %146 : vector<8x256xi1>, vector<8x256xf32>
    %c14 = arith.constant 14 : index
    %c0_108 = arith.constant 0 : index
    %c0_109 = arith.constant 0 : index
    %148 = vector.load %arg1[%c14, %c0_108, %c0_109] : memref<18x8x8xf32, #tpu.memory_space<vmem>>, vector<1x8x8xf32>
    %149 = vector.shape_cast %148 : vector<1x8x8xf32> to vector<8x8xf32>
    %cst_110 = arith.constant dense<0.000000e+00> : vector<8x256xf32>
    %150 = tpu.matmul %149, %147, %cst_110 {dimension_numbers = #tpu.dot_dimension_numbers<[1], [0], [0], [1], [0, 0, 1, 1], [], []>} : vector<8x8xf32>, vector<8x256xf32>, vector<8x256xf32> -> vector<8x256xf32>
    %151 = arith.addf %144, %150 : vector<8x256xf32>
    %c0_111 = arith.constant 0 : index
    %c109_112 = arith.constant 109 : index
    %152 = vector.load %arg5[%c0_111, %c109_112] : memref<8x384xf32, #tpu.memory_space<vmem>>, vector<8x256xf32>
    %cst_113 = arith.constant 0.000000e+00 : f32
    %153 = vector.broadcast %cst_113 : f32 to vector<8x256xf32>
    %154 = arith.select %18, %152, %153 : vector<8x256xi1>, vector<8x256xf32>
    %c15 = arith.constant 15 : index
    %c0_114 = arith.constant 0 : index
    %c0_115 = arith.constant 0 : index
    %155 = vector.load %arg1[%c15, %c0_114, %c0_115] : memref<18x8x8xf32, #tpu.memory_space<vmem>>, vector<1x8x8xf32>
    %156 = vector.shape_cast %155 : vector<1x8x8xf32> to vector<8x8xf32>
    %cst_116 = arith.constant dense<0.000000e+00> : vector<8x256xf32>
    %157 = tpu.matmul %156, %154, %cst_116 {dimension_numbers = #tpu.dot_dimension_numbers<[1], [0], [0], [1], [0, 0, 1, 1], [], []>} : vector<8x8xf32>, vector<8x256xf32>, vector<8x256xf32> -> vector<8x256xf32>
    %158 = arith.addf %151, %157 : vector<8x256xf32>
    %c0_117 = arith.constant 0 : index
    %c112_118 = arith.constant 112 : index
    %159 = vector.load %arg5[%c0_117, %c112_118] : memref<8x384xf32, #tpu.memory_space<vmem>>, vector<8x256xf32>
    %c16_119 = arith.constant 16 : index
    %c0_120 = arith.constant 0 : index
    %c0_121 = arith.constant 0 : index
    %160 = vector.load %arg1[%c16_119, %c0_120, %c0_121] : memref<18x8x8xf32, #tpu.memory_space<vmem>>, vector<1x8x8xf32>
    %161 = vector.shape_cast %160 : vector<1x8x8xf32> to vector<8x8xf32>
    %cst_122 = arith.constant dense<0.000000e+00> : vector<8x256xf32>
    %162 = tpu.matmul %161, %159, %cst_122 {dimension_numbers = #tpu.dot_dimension_numbers<[1], [0], [0], [1], [0, 0, 1, 1], [], []>} : vector<8x8xf32>, vector<8x256xf32>, vector<8x256xf32> -> vector<8x256xf32>
    %163 = arith.addf %158, %162 : vector<8x256xf32>
    %c0_123 = arith.constant 0 : index
    %c115_124 = arith.constant 115 : index
    %164 = vector.load %arg5[%c0_123, %c115_124] : memref<8x384xf32, #tpu.memory_space<vmem>>, vector<8x256xf32>
    %cst_125 = arith.constant 0.000000e+00 : f32
    %165 = vector.broadcast %cst_125 : f32 to vector<8x256xf32>
    %166 = arith.select %20, %164, %165 : vector<8x256xi1>, vector<8x256xf32>
    %c17 = arith.constant 17 : index
    %c0_126 = arith.constant 0 : index
    %c0_127 = arith.constant 0 : index
    %167 = vector.load %arg1[%c17, %c0_126, %c0_127] : memref<18x8x8xf32, #tpu.memory_space<vmem>>, vector<1x8x8xf32>
    %168 = vector.shape_cast %167 : vector<1x8x8xf32> to vector<8x8xf32>
    %cst_128 = arith.constant dense<0.000000e+00> : vector<8x256xf32>
    %169 = tpu.matmul %168, %166, %cst_128 {dimension_numbers = #tpu.dot_dimension_numbers<[1], [0], [0], [1], [0, 0, 1, 1], [], []>} : vector<8x8xf32>, vector<8x256xf32>, vector<8x256xf32> -> vector<8x256xf32>
    %170 = arith.addf %163, %169 : vector<8x256xf32>
    %cst_129 = arith.constant dense<0.000000e+00> : vector<8x256xf32>
    %171 = tpu.matmul %21, %170, %cst_129 {dimension_numbers = #tpu.dot_dimension_numbers<[1], [0], [0], [1], [0, 0, 1, 1], [], []>} : vector<8x8xf32>, vector<8x256xf32>, vector<8x256xf32> -> vector<8x256xf32>
    %cst_130 = arith.constant dense<0.000000e+00> : vector<8xf32>
    %172 = vector.multi_reduction <add>, %171, %cst_130 [1] : vector<8x256xf32> to vector<8xf32>
    %173 = vector.shape_cast %172 : vector<8xf32> to vector<8x1xf32>
    %174 = vector.broadcast %173 : vector<8x1xf32> to vector<8x256xf32>
    %175 = arith.subf %170, %174 : vector<8x256xf32>
    %176 = arith.mulf %175, %175 : vector<8x256xf32>
    %cst_131 = arith.constant dense<0.000000e+00> : vector<8x256xf32>
    %177 = tpu.matmul %21, %176, %cst_131 {dimension_numbers = #tpu.dot_dimension_numbers<[1], [0], [0], [1], [0, 0, 1, 1], [], []>} : vector<8x8xf32>, vector<8x256xf32>, vector<8x256xf32> -> vector<8x256xf32>
    %cst_132 = arith.constant dense<0.000000e+00> : vector<8xf32>
    %178 = vector.multi_reduction <add>, %177, %cst_132 [1] : vector<8x256xf32> to vector<8xf32>
    %179 = vector.shape_cast %178 : vector<8xf32> to vector<8x1xf32>
    %cst_133 = arith.constant 9.99999974E-6 : f32
    %180 = vector.broadcast %cst_133 : f32 to vector<8x1xf32>
    %181 = arith.addf %179, %180 : vector<8x1xf32>
    %182 = math.rsqrt %181 : vector<8x1xf32>
    %183 = arith.mulf %24, %182 : vector<8x1xf32>
    %184 = arith.mulf %173, %183 : vector<8x1xf32>
    %185 = arith.subf %25, %184 : vector<8x1xf32>
    %186 = vector.broadcast %183 : vector<8x1xf32> to vector<8x256xf32>
    %187 = arith.mulf %170, %186 : vector<8x256xf32>
    %188 = vector.broadcast %185 : vector<8x1xf32> to vector<8x256xf32>
    %189 = arith.addf %187, %188 : vector<8x256xf32>
    %190 = arith.addf %189, %31 : vector<8x256xf32>
    %cst_134 = arith.constant 0.000000e+00 : f32
    %191 = vector.broadcast %cst_134 : f32 to vector<8x256xf32>
    %192 = arith.maximumf %190, %191 : vector<8x256xf32>
    %c0_135 = arith.constant 0 : index
    %c0_136 = arith.constant 0 : index
    %193 = vector.load %arg3[%c0_135, %c0_136] : memref<8x256xf32, #tpu.memory_space<vmem>>, vector<8x256xf32>
    tpu.vector_store %arg3[%c0_135, %c0_136], %192 {strides = array<i32>} : memref<8x256xf32, #tpu.memory_space<vmem>>, vector<8x256xf32>,
    return
  }
}

</mosaic_0001>

<bundles_post_ra>
// kernel: tile.23
= control target key start
LH: loop header
LB: loop body
LE: loop exit
PB: predicated region body
PF: predicated region fallthrough
CT: control target
= control target key end

     0   :  { %s22_s0 = inlined_call_operand.vmem [shape: f32[4], index: 0, kind: input, shape index: {}]   ;;  %s23_s1 = inlined_call_operand.vmem [shape: f32[2,4], index: 1, kind: output, shape index: {}]  }
   0x1   :  { %v4_v0 = vld [vmem:[%s22_s0] ss:$0 sm:$0xff] }
   0x2   :  { %5 = vst [vmem:[%s23_s1] sm:$0x3] %v4_v0 }

// kernel: tile.0
= control target key start
LH: loop header
LB: loop body
LE: loop exit
PB: predicated region body
PF: predicated region fallthrough
CT: control target
= control target key end

     0   :  { %s34_s8 = smov 125   ;;  %vm7_vm0 = vcmask 7168   ;;  %s35_s11 = smov 126   ;;  %s61_s0 = inlined_call_operand.vmem [shape: f32[2,4], index: 0, kind: input, shape index: {}]   ;;  %s62_s1 = inlined_call_operand.vmem [shape: f32[8,1], index: 1, kind: output, shape index: {}]  }
   0x1   :  { %v4_v0 = vld [vmem:[%s61_s0] sm:$0x3]  ;;  %s33_s0 = smov 127  }
   0x2   :  { %5 = vst [vmem:[#allocation0] sm:$0x3] %v4_v0 }
   0x9   :  { %v9_v1 = vld [vmem:[#allocation0] sm:$0x3]  }
   0xa   :  { %v21_v2 = vld [vmem:[#allocation0] sm:$0x3]   ;;  %10 = vrot.lane.b32.xlu0 %v9_v1, %s33_s0 }
   0xb   :  { %22 = vrot.lane.b32.xlu1 %v21_v2, %s34_s8  ;;  %v6_v3 = vld [vmem:[#allocation0] sm:$0x3]  }
   0xc   :  { %v15_v4 = vld [vmem:[#allocation0] sm:$0x3]   ;;  %8 = vst.msk [vmem:[%s62_s1] ss:$4 sm:$0x3] %vm7_vm0, %v6_v3  }
   0xe   :  { %16 = vrot.lane.b32.xlu0 %v15_v4, %s35_s11 }
  0x7c   :  { %v11_v5 = vpop.permute.xlu0 %10  }
  0x7d   :  { %v23_v6 = vpop.permute.xlu1 %22   ;;  %27 = vst.msk [vmem:[%s62_s1 + $0x1] ss:$4 sm:$0x3] %vm7_vm0, %v11_v5  }
  0x7e   :  { %29 = vst.msk [vmem:[%s62_s1 + $0x3] ss:$4 sm:$0x3] %vm7_vm0, %v23_v6  }
  0x80   :  { %v17_v7 = vpop.permute.xlu0 %16  }
  0x81   :  { %28 = vst.msk [vmem:[%s62_s1 + $0x2] ss:$4 sm:$0x3] %vm7_vm0, %v17_v7  }

// kernel: residual_block_with_dilation.1
= control target key start
LH: loop header
LB: loop body
LE: loop exit
PB: predicated region body
PF: predicated region fallthrough
CT: control target
= control target key end

     0   :  { %vm46_vm0 = vcmask 523264   ;;  %vm48_vm1 = vcmask 1048064   ;;  %v2184_v1 = vmov 0.0   ;;  %s2185_s14 = smov 64   ;;  %s2186_s17 = smov 112   ;;  %v14_v8 = vlaneseq  ;;  %s2524_s0 = inlined_call_operand.vmem [shape: f32[8,256], index: 0, kind: input, shape index: {}]   ;;  %s2525_s1 = inlined_call_operand.vmem [shape: f32[18,8,8], index: 1, kind: input, shape index: {}]   ;;  %s2526_s2 = inlined_call_operand.vmem [shape: f32[8,12], index: 2, kind: input, shape index: {}]   ;;  %s2527_s3 = inlined_call_operand.vmem [shape: f32[8,256], index: 3, kind: output, shape index: {}]  }
   0x1   :  { %v2222_v0 = vld [vmem:[%s2524_s0] sm:$0xff]  ;;  %47 = vst.msk [vmem:[#allocation2] sm:$0xff] %vm46_vm0, %v2184_v1  ;;  %50 = vst.msk [vmem:[#allocation3] sm:$0xff] %vm46_vm0, %v2184_v1  ;;  %168 = vmatprep.mubr.f32.mxu0 %v2184_v1  ;;  %948 = vmatprep.mubr.f32.mxu1 %v2184_v1  ;;  %v2239_v2 = vld [vmem:[%s2524_s0 + $0x8] sm:$0xff]  ;;  %s2187_s0 = smov 115   ;;  %s2188_s18 = smov 109  }
   0x2   :  { %49 = vst.msk [vmem:[#allocation2 + $0x10] sm:$0xff] %vm48_vm1, %v2184_v1  ;;  %51 = vst.msk [vmem:[#allocation3 + $0x10] sm:$0xff] %vm48_vm1, %v2184_v1  ;;  %56 = vrot.lane.b32.xlu0 %v2222_v0, %s2185_s14  ;;  %s2189_s19 = smov 67   ;;  %s2190_s20 = smov 61   ;;  %v15_v9 = vand.u32 127, %v14_v8  ;;  %vm95_vm2 = vcmask 916480  }
   0x3   :  { %s2191_s21 = smov 19   ;;  %s2192_s22 = smov 16   ;;  %v2065_v17 = vld [vmem:[%s2525_s1 + $0x8] sm:$0xff]  ;;  %vm100_vm3 = vcmask 64512   ;;  %vm79_vm4 = vcmask 941056   ;;  %v86_v28 = vld [vmem:[%s2525_s1] sm:$0xff] }
   0x4   :  { %s2193_s23 = smov 13   ;;  %v16_v10 = vadd.s32 128, %v15_v9  ;;  %v21_v20 = vand.u32 15, %v15_v9  ;;  %vm255_vm7 = vcmask 891904   ;;  %vm346_vm10 = vcmask 547840   ;;  %v2070_v38 = vld [vmem:[%s2525_s1 + $0x10] sm:$0xff] }
   0x5   :  { %v2074_v44 = vld [vmem:[%s2525_s1 + $0x18] sm:$0xff]  ;;  %vm525_vm11 = vcmask 498688   ;;  %v2078_v51 = vld [vmem:[%s2525_s1 + $0x20] sm:$0xff]  ;;  %vm616_vm12 = vcmask 154624   ;;  %v2080_v57 = vld [vmem:[%s2525_s1 + $0x28] sm:$0xff]  ;;  %vm709_vm13 = vcmask 130048  }
   0x6   :  { %58 = vrot.lane.b32.xlu0 %v2239_v2, %s2185_s14  ;;  %v28_v13 = vand.u32 15, %v16_v10  ;;  %vm2287_vm6 = vcmp.ge.s32.totalorder %v21_v20, 3  ;;  %vm2302_vm9 = vcmp.lt.s32.totalorder %v21_v20, 13  ;;  %v2084_v62 = vld [vmem:[%s2525_s1 + $0x30] sm:$0xff]  ;;  %vm796_vm14 = vcmask 105472   ;;  %v2090_v9 = vld [vmem:[%s2525_s1 + $0x40] sm:$0xff] }
   0x7   :  { %v2116_v19 = vld [vmem:[%s2525_s1 + $0x78] sm:$0xff] }
   0x8   :  { %vm2278_vm5 = vcmp.ge.s32.totalorder %v28_v13, 3  ;;  %vm2297_vm8 = vcmp.lt.s32.totalorder %v28_v13, 13 }
  0x74   :  { %v57_v3 = vpop.permute.xlu0 %56 }
  0x75   :  { %64 = vst.msk [vmem:[#allocation2] sm:$0xff] %vm48_vm1, %v57_v3 }
  0x78   :  { %v59_v4 = vpop.permute.xlu0 %58 }
  0x79   :  { %v60_v5 = vsel %vm46_vm0, %v57_v3, %v59_v4  ;;  %66 = vst.msk [vmem:[#allocation2 + $0x10] sm:$0xff] %vm46_vm0, %v59_v4 }
  0x7a   :  { %91 = vrot.lane.b32.xlu1 %v60_v5, %s2186_s17 }
  0x7c   :  { %v67_v6 = vld [vmem:[#allocation2] sm:$0xff] }
  0x7d   :  { %89 = vrot.lane.b32.xlu0 %v67_v6, %s2186_s17 }
  0x80   :  { %v69_v7 = vld [vmem:[#allocation2 + $0x10] sm:$0xff] }
  0x81   :  { %77 = vrot.lane.b32.xlu0 %v69_v7, %s2187_s0  ;;  %93 = vrot.lane.b32.xlu1 %v69_v7, %s2186_s17 }
  0x85   :  { %251 = vrot.lane.b32.xlu0 %v60_v5, %s2188_s18  ;;  %75 = vrot.lane.b32.xlu1 %v60_v5, %s2187_s0 }
  0x89   :  { %249 = vrot.lane.b32.xlu0 %v67_v6, %s2188_s18  ;;  %73 = vrot.lane.b32.xlu1 %v67_v6, %s2187_s0 }
  0x8d   :  { %344 = vrot.lane.b32.xlu0 %v69_v7, %s2189_s19  ;;  %253 = vrot.lane.b32.xlu1 %v69_v7, %s2188_s18 }
  0x91   :  { %435 = vrot.lane.b32.xlu0 %v60_v5, %s2185_s14  ;;  %342 = vrot.lane.b32.xlu1 %v60_v5, %s2189_s19 }
  0x95   :  { %433 = vrot.lane.b32.xlu0 %v67_v6, %s2185_s14  ;;  %340 = vrot.lane.b32.xlu1 %v67_v6, %s2189_s19 }
  0x99   :  { %523 = vrot.lane.b32.xlu0 %v69_v7, %s2190_s20  ;;  %437 = vrot.lane.b32.xlu1 %v69_v7, %s2185_s14 }
  0x9d   :  { %612 = vrot.lane.b32.xlu0 %v60_v5, %s2191_s21  ;;  %521 = vrot.lane.b32.xlu1 %v60_v5, %s2190_s20 }
  0xa1   :  { %610 = vrot.lane.b32.xlu0 %v67_v6, %s2191_s21  ;;  %519 = vrot.lane.b32.xlu1 %v67_v6, %s2190_s20 }
  0xa5   :  { %707 = vrot.lane.b32.xlu0 %v69_v7, %s2192_s22  ;;  %614 = vrot.lane.b32.xlu1 %v69_v7, %s2191_s21 }
  0xa9   :  { %792 = vrot.lane.b32.xlu0 %v60_v5, %s2193_s23  ;;  %705 = vrot.lane.b32.xlu1 %v60_v5, %s2192_s22 }
  0xad   :  { %790 = vrot.lane.b32.xlu0 %v67_v6, %s2193_s23  ;;  %703 = vrot.lane.b32.xlu1 %v67_v6, %s2192_s22 }
  0xb1   :  { %794 = vrot.lane.b32.xlu1 %v69_v7, %s2193_s23  ;;  %v2088_v7 = vld [vmem:[%s2525_s1 + $0x38] sm:$0xff] }
  0xec   :  { %v92_v12 = vpop.permute.xlu1 %91 }
  0xef   :  { %v90_v11 = vpop.permute.xlu0 %89 }
  0xf0   :  { %v96_v18 = vsel %vm95_vm2, %v90_v11, %v92_v12 }
  0xf3   :  { %v78_v14 = vpop.permute.xlu0 %77  ;;  %v94_v15 = vpop.permute.xlu1 %93 }
  0xf4   :  { %v97_v16 = vsel %vm95_vm2, %v92_v12, %v94_v15  ;;  %v2379_v12 = vld [vmem:[%s2526_s2] sm:$0xff]  ;;  %s2195_s2 = smov 1  }
  0xf5   :  { %104 = vmatprep.subr.mxu0 %v97_v16 }
  0xf6   :  { %105 = vmatpush1.msra.mxu0 %v96_v18 }
  0xf7   :  { %v252_v21 = vpop.permute.xlu0 %251  ;;  %v76_v22 = vpop.permute.xlu1 %75  ;;  %2066 = vmatmul.mubr.msk.f32.vlgmr.msra.gmra.mrb[0].mxu0 %vm100_vm3, %v2065_v17 }
  0xf8   :  { %v81_v23 = vsel %vm79_vm4, %v76_v22, %v78_v14  ;;  %242 = vmatprep.mubr.f32.mxu0 %v2184_v1 }
  0xf9   :  { %2067 = vmatprep.subr.msk.mxu0 %vm2278_vm5, %v81_v23 }
  0xfb   :  { %v250_v25 = vpop.permute.xlu0 %249  ;;  %v74_v26 = vpop.permute.xlu1 %73 }
  0xfc   :  { %v80_v27 = vsel %vm79_vm4, %v74_v26, %v76_v22  ;;  %v256_v34 = vsel %vm255_vm7, %v250_v25, %v252_v21  ;;  %v2194_v26 = vmov 8  }
  0xfd   :  { %2068 = vmatpush1.msk.msra.mxu0 %vm2287_vm6, %v80_v27  ;;  %2175 = vset.pattern.permute.xlu1 %v2194_v26  ;;  %v2110_v26 = vld [vmem:[%s2525_s1 + $0x68] sm:$0xff] }
  0xff   :  { %v345_v30 = vpop.permute.xlu0 %344  ;;  %v254_v31 = vpop.permute.xlu1 %253  ;;  %2069 = vmatmul.mubr.msk.f32.vlgmr.msra.gmra.mrb[0].mxu0 %vm100_vm3, %v86_v28 }
 0x100   :  { %v257_v33 = vsel %vm255_vm7, %v252_v21, %v254_v31  ;;  %331 = vmatprep.mubr.f32.mxu0 %v2184_v1 }
 0x101   :  { %2071 = vmatprep.subr.msk.mxu0 %vm2297_vm8, %v257_v33 }
 0x102   :  { %2072 = vmatpush1.msk.msra.mxu0 %vm2302_vm9, %v256_v34  ;;  %v2196_v34 = vmov 9  }
 0x103   :  { %v436_v35 = vpop.permute.xlu0 %435  ;;  %v343_v36 = vpop.permute.xlu1 %342 }
 0x104   :  { %v348_v37 = vsel %vm346_vm10, %v343_v36, %v345_v30 }
 0x105   :  { %2075 = vmatprep.subr.msk.mxu0 %vm2278_vm5, %v348_v37 }
 0x107   :  { %v434_v39 = vpop.permute.xlu0 %433  ;;  %v341_v40 = vpop.permute.xlu1 %340  ;;  %2073 = vmatmul.mubr.msk.f32.vlgmr.msra.gmra.mrb[0].mxu0 %vm100_vm3, %v2070_v38 }
 0x108   :  { %v347_v41 = vsel %vm346_vm10, %v341_v40, %v343_v36  ;;  %422 = vmatprep.mubr.f32.mxu0 %v2184_v1  ;;  %v439_v46 = vsel %vm46_vm0, %v434_v39, %v436_v35 }
 0x109   :  { %2076 = vmatpush1.msk.msra.mxu0 %vm2287_vm6, %v347_v41 }
 0x10b   :  { %v438_v42 = vpop.permute.xlu1 %437  ;;  %v524_v45 = vpop.permute.xlu0 %523 }
 0x10c   :  { %v440_v43 = vsel %vm46_vm0, %v436_v35, %v438_v42 }
 0x10d   :  { %446 = vmatprep.subr.mxu0 %v440_v43 }
 0x10f   :  { %v522_v47 = vpop.permute.xlu1 %521  ;;  %2077 = vmatmul.mubr.msk.f32.vlgmr.msra.gmra.mrb[0].mxu0 %vm100_vm3, %v2074_v44  ;;  %v613_v49 = vpop.permute.xlu0 %612 }
 0x110   :  { %v527_v48 = vsel %vm525_vm11, %v522_v47, %v524_v45  ;;  %447 = vmatpush1.msra.mxu0 %v439_v46  ;;  %510 = vmatprep.mubr.f32.mxu0 %v2184_v1 }
 0x111   :  { %2081 = vmatprep.subr.msk.mxu0 %vm2297_vm8, %v527_v48 }
 0x113   :  { %v520_v50 = vpop.permute.xlu1 %519  ;;  %v611_v55 = vpop.permute.xlu0 %610 }
 0x114   :  { %v526_v52 = vsel %vm525_vm11, %v520_v50, %v522_v47  ;;  %v617_v58 = vsel %vm616_vm12, %v611_v55, %v613_v49  ;;  %v2097_v55 = vld [vmem:[%s2525_s1 + $0x50] sm:$0xff] }
 0x117   :  { %v615_v53 = vpop.permute.xlu1 %614  ;;  %2079 = vmatmul.mubr.msk.f32.vlgmr.msra.gmra.mrb[0].mxu0 %vm100_vm3, %v2078_v51  ;;  %v708_v59 = vpop.permute.xlu0 %707 }
 0x118   :  { %v618_v54 = vsel %vm616_vm12, %v613_v49, %v615_v53  ;;  %2082 = vmatpush1.msk.msra.mxu0 %vm2302_vm9, %v526_v52  ;;  %601 = vmatprep.mubr.f32.mxu0 %v2184_v1 }
 0x119   :  { %2085 = vmatprep.subr.msk.mxu0 %vm2278_vm5, %v618_v54 }
 0x11b   :  { %v706_v56 = vpop.permute.xlu1 %705  ;;  %v793_v3 = vpop.permute.xlu0 %792 }
 0x11c   :  { %v711_v61 = vsel %vm709_vm13, %v706_v56, %v708_v59 }
 0x11f   :  { %v704_v60 = vpop.permute.xlu1 %703  ;;  %2083 = vmatmul.mubr.msk.f32.vlgmr.msra.gmra.mrb[0].mxu0 %vm100_vm3, %v2080_v57  ;;  %v791_v6 = vpop.permute.xlu0 %790 }
 0x120   :  { %2086 = vmatpush1.msk.msra.mxu0 %vm2287_vm6, %v617_v58  ;;  %692 = vmatprep.mubr.f32.mxu0 %v2184_v1  ;;  %v710_v4 = vsel %vm709_vm13, %v704_v60, %v706_v56  ;;  %v797_v8 = vsel %vm796_vm14, %v791_v6, %v793_v3 }
 0x121   :  { %717 = vmatprep.subr.mxu0 %v711_v61 }
 0x123   :  { %v795_v63 = vpop.permute.xlu1 %794 }
 0x124   :  { %v798_v5 = vsel %vm796_vm14, %v793_v3, %v795_v63 }
 0x127   :  { %2087 = vmatmul.mubr.msk.f32.vlgmr.msra.gmra.mrb[0].mxu0 %vm100_vm3, %v2084_v62  ;;  %v2096_v62 = vld [vmem:[%s2525_s1 + $0x48] sm:$0xff] }
 0x128   :  { %718 = vmatpush1.msra.mxu0 %v710_v4  ;;  %781 = vmatprep.mubr.f32.mxu0 %v2184_v1 }
 0x129   :  { %2091 = vmatprep.subr.msk.mxu0 %vm2297_vm8, %v798_v5 }
 0x12f   :  { %2089 = vmatmul.mubr.msk.f32.vlgmr.msra.gmra.mrb[0].mxu0 %vm100_vm3, %v2088_v7 }
 0x130   :  { %2092 = vmatpush1.msk.msra.mxu0 %vm2302_vm9, %v797_v8  ;;  %872 = vmatprep.mubr.f32.mxu0 %v2184_v1 }
 0x137   :  { %2093 = vmatmul.mubr.msk.f32.vlgmr.msra.gmra.mrb[0].mxu0 %vm100_vm3, %v2090_v9  ;;  %v2102_v9 = vld [vmem:[%s2525_s1 + $0x58] sm:$0xff] }
 0x138   :  { %1944 = vmatprep.mubr.f32.mxu0 %v2184_v1 }
 0x20a   :  { %v874_v10 = vpop.f32.mrb[0].mxu0 }
 0x20b   :  { %v876_v11 = vpop.f32.mrb[1].mxu0 }
 0x20c   :  { %884 = vmatprep.subr.mxu1 %v876_v11 }
 0x20d   :  { %885 = vmatpush1.msra.mxu1 %v874_v10 }
 0x20e   :  { %2094 = vmatmul.mubr.msk.f32.vlgmr.msra.gmra.mrb[0].mxu1 %vm100_vm3, %v2379_v12 }
 0x20f   :  { %1026 = vmatprep.mubr.f32.mxu1 %v2184_v1 }
 0x2e1   :  { %v950_v13 = vpop.f32.mrb[0].mxu1 }
 0x2e2   :  { %v952_v14 = vpop.f32.mrb[1].mxu1 }
 0x2e3   :  { %v955_v15 = vadd.f32 %v952_v14, %v950_v13 }
 0x2e5   :  { %956 = vadd.xlane.f32.xlu1 %v955_v15 }
 0x372   :  { %v957_v16 = vpop.xlane.xlu1 %956 }
 0x373   :  { %v958_v17 = vsub.f32 %v874_v10, %v957_v16  ;;  %v959_v18 = vsub.f32 %v876_v11, %v957_v16 }
 0x375   :  { %v960_v20 = vmul.f32 %v958_v17, %v958_v17  ;;  %v961_v21 = vmul.f32 %v959_v18, %v959_v18  ;;  %v2106_v17 = vld [vmem:[%s2525_s1 + $0x60] sm:$0xff] }
 0x377   :  { %962 = vmatprep.subr.mxu1 %v961_v21 }
 0x378   :  { %963 = vmatpush1.msra.mxu1 %v960_v20 }
 0x379   :  { %2095 = vmatmul.mubr.msk.f32.vlgmr.msra.gmra.mrb[2].mxu1 %vm100_vm3, %v2379_v12 }
 0x37a   :  { %1173 = vmatprep.mubr.f32.mxu1 %v2184_v1 }
 0x44c   :  { %v1028_v22 = vpop.f32.mrb[2].mxu1 }
 0x44d   :  { %v1030_v23 = vpop.f32.mrb[3].mxu1 }
 0x44e   :  { %v1033_v25 = vadd.f32 %v1030_v23, %v1028_v22 }
 0x450   :  { %1034 = vadd.xlane.f32.xlu0 %v1033_v25 }
 0x4dd   :  { %v1035_v27 = vpop.xlane.xlu0 %1034 }
 0x4de   :  { %v1036_v28 = vadd.f32 1e-05, %v1035_v27 }
 0x4e0   :  { %2180 = vrsqrt.f32 %v1036_v28 }
 0x4ea   :  { %v2181_v30 = vpop.eup %2180 }
 0x4eb   :  { %v1038_v31 = vmul.f32 %v2181_v30, %v2379_v12 }
 0x4ed   :  { %1047 = vperm.xlu1 %2175, %v1038_v31   ;;  %v1039_v33 = vmul.f32 %v1038_v31, %v957_v16 }
 0x4ef   :  { %1041 = vrot.lane.b32.xlu0 %v1039_v33, %s2195_s2 }
 0x4f1   :  { %2176 = vset.pattern.permute.xlu1 %v2196_v34  ;;  %v2112_v34 = vld [vmem:[%s2525_s1 + $0x70] sm:$0xff] }
 0x561   :  { %v1042_v35 = vpop.permute.xlu0 %1041 }
 0x562   :  { %v1044_v36 = vsub.f32 %v2379_v12, %v1042_v35 }
 0x564   :  { %1054 = vperm.xlu1 %2176, %v1044_v36  }
 0x56c   :  { %v1048_v37 = vpop.permute.xlu1 %1047 }
 0x56d   :  { %v1050_v38 = vmul.f32 %v1048_v37, %v874_v10  ;;  %v1051_v39 = vmul.f32 %v1048_v37, %v876_v11 }
 0x5e3   :  { %v1055_v40 = vpop.permute.xlu1 %1054 }
 0x5e4   :  { %v1057_v41 = vadd.f32 %v1055_v40, %v1050_v38  ;;  %v1058_v42 = vadd.f32 %v1055_v40, %v1051_v39 }
 0x5e6   :  { %v1059_v43 = vmax.f32 %v1057_v41, 0.0  ;;  %v1060_v44 = vmax.f32 %v1058_v42, 0.0 }
 0x5e8   :  { %1065 = vrot.lane.b32.xlu1 %v1060_v44, %s2185_s14  ;;  %1063 = vrot.lane.b32.xlu0 %v1059_v43, %s2185_s14  ;;  %v2120_v43 = vld [vmem:[%s2525_s1 + $0x80] sm:$0xff] }
 0x65a   :  { %v1066_v45 = vpop.permute.xlu1 %1065  ;;  %v1064_v46 = vpop.permute.xlu0 %1063 }
 0x65b   :  { %1073 = vst.msk [vmem:[#allocation3 + $0x10] sm:$0xff] %vm46_vm0, %v1066_v45  ;;  %v1067_v47 = vsel %vm46_vm0, %v1064_v46, %v1066_v45  ;;  %v2122_v45 = vld [vmem:[%s2525_s1 + $0x88] sm:$0xff] }
 0x65c   :  { %1071 = vst.msk [vmem:[#allocation3] sm:$0xff] %vm48_vm1, %v1064_v46  ;;  %1098 = vrot.lane.b32.xlu0 %v1067_v47, %s2186_s17 }
 0x662   :  { %v1076_v48 = vld [vmem:[#allocation3 + $0x10] sm:$0xff] }
 0x663   :  { %v1074_v49 = vld [vmem:[#allocation3] sm:$0xff]  ;;  %1100 = vrot.lane.b32.xlu1 %v1076_v48, %s2186_s17 }
 0x664   :  { %1096 = vrot.lane.b32.xlu0 %v1074_v49, %s2186_s17 }
 0x667   :  { %1082 = vrot.lane.b32.xlu1 %v1067_v47, %s2187_s0 }
 0x668   :  { %1084 = vrot.lane.b32.xlu0 %v1076_v48, %s2187_s0 }
 0x66b   :  { %1080 = vrot.lane.b32.xlu1 %v1074_v49, %s2187_s0 }
 0x66c   :  { %1256 = vrot.lane.b32.xlu0 %v1067_v47, %s2188_s18 }
 0x66f   :  { %1258 = vrot.lane.b32.xlu1 %v1076_v48, %s2188_s18 }
 0x670   :  { %1254 = vrot.lane.b32.xlu0 %v1074_v49, %s2188_s18 }
 0x673   :  { %1346 = vrot.lane.b32.xlu1 %v1067_v47, %s2189_s19 }
 0x674   :  { %1348 = vrot.lane.b32.xlu0 %v1076_v48, %s2189_s19 }
 0x677   :  { %1344 = vrot.lane.b32.xlu1 %v1074_v49, %s2189_s19 }
 0x678   :  { %1438 = vrot.lane.b32.xlu0 %v1067_v47, %s2185_s14 }
 0x67b   :  { %1440 = vrot.lane.b32.xlu1 %v1076_v48, %s2185_s14 }
 0x67c   :  { %1436 = vrot.lane.b32.xlu0 %v1074_v49, %s2185_s14 }
 0x67f   :  { %1524 = vrot.lane.b32.xlu1 %v1067_v47, %s2190_s20 }
 0x680   :  { %1526 = vrot.lane.b32.xlu0 %v1076_v48, %s2190_s20 }
 0x683   :  { %1522 = vrot.lane.b32.xlu1 %v1074_v49, %s2190_s20 }
 0x684   :  { %1614 = vrot.lane.b32.xlu0 %v1067_v47, %s2191_s21 }
 0x687   :  { %1616 = vrot.lane.b32.xlu1 %v1076_v48, %s2191_s21 }
 0x688   :  { %1612 = vrot.lane.b32.xlu0 %v1074_v49, %s2191_s21 }
 0x68b   :  { %1706 = vrot.lane.b32.xlu1 %v1067_v47, %s2192_s22 }
 0x68c   :  { %1708 = vrot.lane.b32.xlu0 %v1076_v48, %s2192_s22 }
 0x68f   :  { %1704 = vrot.lane.b32.xlu1 %v1074_v49, %s2192_s22 }
 0x690   :  { %1792 = vrot.lane.b32.xlu0 %v1067_v47, %s2193_s23 }
 0x693   :  { %1794 = vrot.lane.b32.xlu1 %v1076_v48, %s2193_s23 }
 0x694   :  { %1790 = vrot.lane.b32.xlu0 %v1074_v49, %s2193_s23 }
 0x6ce   :  { %v1099_v50 = vpop.permute.xlu0 %1098 }
 0x6d5   :  { %v1101_v51 = vpop.permute.xlu1 %1100 }
 0x6d6   :  { %v1097_v52 = vpop.permute.xlu0 %1096  ;;  %v1103_v53 = vsel %vm95_vm2, %v1099_v50, %v1101_v51 }
 0x6d7   :  { %v1102_v54 = vsel %vm95_vm2, %v1097_v52, %v1099_v50  ;;  %1109 = vmatprep.subr.mxu1 %v1103_v53 }
 0x6d8   :  { %1110 = vmatpush1.msra.mxu1 %v1102_v54 }
 0x6d9   :  { %v1083_v56 = vpop.permute.xlu1 %1082  ;;  %2098 = vmatmul.mubr.msk.f32.vlgmr.msra.gmra.mrb[4].mxu1 %vm100_vm3, %v2097_v55 }
 0x6da   :  { %v1085_v57 = vpop.permute.xlu0 %1084  ;;  %1247 = vmatprep.mubr.f32.mxu1 %v2184_v1 }
 0x6db   :  { %v1087_v58 = vsel %vm79_vm4, %v1083_v56, %v1085_v57  ;;  %v2197_v57 = vmov 10  }
 0x6dc   :  { %2099 = vmatprep.subr.msk.mxu1 %vm2278_vm5, %v1087_v58  ;;  %2177 = vset.pattern.permute.xlu1 %v2197_v57 }
 0x6dd   :  { %v1081_v59 = vpop.permute.xlu1 %1080 }
 0x6de   :  { %v1257_v60 = vpop.permute.xlu0 %1256  ;;  %v1086_v61 = vsel %vm79_vm4, %v1081_v59, %v1083_v56  ;;  %v2198_v59 = vmov 11  }
 0x6df   :  { %2100 = vmatpush1.msk.msra.mxu1 %vm2287_vm6, %v1086_v61  ;;  %2179 = vset.pattern.permute.xlu0 %v2198_v59 }
 0x6e1   :  { %v1259_v63 = vpop.permute.xlu1 %1258  ;;  %2101 = vmatmul.mubr.msk.f32.vlgmr.msra.gmra.mrb[4].mxu1 %vm100_vm3, %v2096_v62 }
 0x6e2   :  { %v1255_v3 = vpop.permute.xlu0 %1254  ;;  %v1261_v4 = vsel %vm255_vm7, %v1257_v60, %v1259_v63  ;;  %1335 = vmatprep.mubr.f32.mxu1 %v2184_v1 }
 0x6e3   :  { %v1260_v5 = vsel %vm255_vm7, %v1255_v3, %v1257_v60  ;;  %2103 = vmatprep.subr.msk.mxu1 %vm2297_vm8, %v1261_v4 }
 0x6e4   :  { %2104 = vmatpush1.msk.msra.mxu1 %vm2302_vm9, %v1260_v5 }
 0x6e5   :  { %v1347_v6 = vpop.permute.xlu1 %1346 }
 0x6e6   :  { %v1349_v7 = vpop.permute.xlu0 %1348 }
 0x6e7   :  { %v1351_v8 = vsel %vm346_vm10, %v1347_v6, %v1349_v7 }
 0x6e8   :  { %2107 = vmatprep.subr.msk.mxu1 %vm2278_vm5, %v1351_v8 }
 0x6e9   :  { %v1345_v10 = vpop.permute.xlu1 %1344  ;;  %2105 = vmatmul.mubr.msk.f32.vlgmr.msra.gmra.mrb[4].mxu1 %vm100_vm3, %v2102_v9 }
 0x6ea   :  { %v1439_v11 = vpop.permute.xlu0 %1438  ;;  %v1350_v13 = vsel %vm346_vm10, %v1345_v10, %v1347_v6  ;;  %1425 = vmatprep.mubr.f32.mxu1 %v2184_v1 }
 0x6eb   :  { %2108 = vmatpush1.msk.msra.mxu1 %vm2287_vm6, %v1350_v13 }
 0x6ed   :  { %v1441_v14 = vpop.permute.xlu1 %1440 }
 0x6ee   :  { %v1437_v15 = vpop.permute.xlu0 %1436  ;;  %v1443_v16 = vsel %vm46_vm0, %v1439_v11, %v1441_v14 }
 0x6ef   :  { %1449 = vmatprep.subr.mxu1 %v1443_v16  ;;  %v1442_v20 = vsel %vm46_vm0, %v1437_v15, %v1439_v11 }
 0x6f1   :  { %v1525_v18 = vpop.permute.xlu1 %1524  ;;  %2109 = vmatmul.mubr.msk.f32.vlgmr.msra.gmra.mrb[4].mxu1 %vm100_vm3, %v2106_v17 }
 0x6f2   :  { %v1527_v21 = vpop.permute.xlu0 %1526  ;;  %1450 = vmatpush1.msra.mxu1 %v1442_v20  ;;  %1513 = vmatprep.mubr.f32.mxu1 %v2184_v1 }
 0x6f3   :  { %v1529_v22 = vsel %vm525_vm11, %v1525_v18, %v1527_v21 }
 0x6f4   :  { %2113 = vmatprep.subr.msk.mxu1 %vm2297_vm8, %v1529_v22 }
 0x6f5   :  { %v1523_v23 = vpop.permute.xlu1 %1522 }
 0x6f6   :  { %v1615_v25 = vpop.permute.xlu0 %1614  ;;  %v1528_v27 = vsel %vm525_vm11, %v1523_v23, %v1525_v18 }
 0x6f9   :  { %v1617_v28 = vpop.permute.xlu1 %1616  ;;  %2111 = vmatmul.mubr.msk.f32.vlgmr.msra.gmra.mrb[4].mxu1 %vm100_vm3, %v2110_v26 }
 0x6fa   :  { %v1613_v30 = vpop.permute.xlu0 %1612  ;;  %v1619_v31 = vsel %vm616_vm12, %v1615_v25, %v1617_v28  ;;  %2114 = vmatpush1.msk.msra.mxu1 %vm2302_vm9, %v1528_v27  ;;  %1603 = vmatprep.mubr.f32.mxu1 %v2184_v1 }
 0x6fb   :  { %2117 = vmatprep.subr.msk.mxu1 %vm2278_vm5, %v1619_v31  ;;  %v1618_v36 = vsel %vm616_vm12, %v1613_v30, %v1615_v25 }
 0x6fd   :  { %v1707_v33 = vpop.permute.xlu1 %1706 }
 0x6fe   :  { %v1709_v35 = vpop.permute.xlu0 %1708 }
 0x6ff   :  { %v1711_v38 = vsel %vm709_vm13, %v1707_v33, %v1709_v35 }
 0x701   :  { %v1705_v37 = vpop.permute.xlu1 %1704  ;;  %2115 = vmatmul.mubr.msk.f32.vlgmr.msra.gmra.mrb[4].mxu1 %vm100_vm3, %v2112_v34 }
 0x702   :  { %2118 = vmatpush1.msk.msra.mxu1 %vm2287_vm6, %v1618_v36  ;;  %1693 = vmatprep.mubr.f32.mxu1 %v2184_v1  ;;  %v1793_v40 = vpop.permute.xlu0 %1792  ;;  %v1710_v41 = vsel %vm709_vm13, %v1705_v37, %v1707_v33 }
 0x703   :  { %1717 = vmatprep.subr.mxu1 %v1711_v38 }
 0x705   :  { %v1795_v39 = vpop.permute.xlu1 %1794 }
 0x706   :  { %v1797_v42 = vsel %vm796_vm14, %v1793_v40, %v1795_v39  ;;  %v1791_v24 = vpop.permute.xlu0 %1790 }
 0x707   :  { %v1796_v44 = vsel %vm796_vm14, %v1791_v24, %v1793_v40 }
 0x709   :  { %2119 = vmatmul.mubr.msk.f32.vlgmr.msra.gmra.mrb[4].mxu1 %vm100_vm3, %v2116_v19 }
 0x70a   :  { %1718 = vmatpush1.msra.mxu1 %v1710_v41  ;;  %1781 = vmatprep.mubr.f32.mxu1 %v2184_v1 }
 0x70b   :  { %2123 = vmatprep.subr.msk.mxu1 %vm2297_vm8, %v1797_v42 }
 0x711   :  { %2121 = vmatmul.mubr.msk.f32.vlgmr.msra.gmra.mrb[4].mxu1 %vm100_vm3, %v2120_v43 }
 0x712   :  { %2124 = vmatpush1.msk.msra.mxu1 %vm2302_vm9, %v1796_v44  ;;  %1871 = vmatprep.mubr.f32.mxu1 %v2184_v1 }
 0x719   :  { %2125 = vmatmul.mubr.msk.f32.vlgmr.msra.gmra.mrb[4].mxu1 %vm100_vm3, %v2122_v45 }
 0x7ec   :  { %v1873_v29 = vpop.f32.mrb[4].mxu1 }
 0x7ed   :  { %v1875_v46 = vpop.f32.mrb[5].mxu1 }
 0x7ee   :  { %1880 = vmatprep.subr.mxu0 %v1875_v46 }
 0x7ef   :  { %1881 = vmatpush1.msra.mxu0 %v1873_v29 }
 0x7f0   :  { %2126 = vmatmul.mubr.msk.f32.vlgmr.msra.gmra.mrb[2].mxu0 %vm100_vm3, %v2379_v12 }
 0x7f1   :  { %2022 = vmatprep.mubr.f32.mxu0 %v2184_v1 }
 0x8c3   :  { %v1946_v47 = vpop.f32.mrb[2].mxu0 }
 0x8c4   :  { %v1948_v32 = vpop.f32.mrb[3].mxu0 }
 0x8c5   :  { %v1951_v48 = vadd.f32 %v1948_v32, %v1946_v47 }
 0x8c7   :  { %1952 = vadd.xlane.f32.xlu1 %v1951_v48 }
 0x954   :  { %v1953_v49 = vpop.xlane.xlu1 %1952 }
 0x955   :  { %v1954_v50 = vsub.f32 %v1873_v29, %v1953_v49  ;;  %v1955_v51 = vsub.f32 %v1875_v46, %v1953_v49 }
 0x957   :  { %v1956_v52 = vmul.f32 %v1954_v50, %v1954_v50  ;;  %v1957_v53 = vmul.f32 %v1955_v51, %v1955_v51 }
 0x959   :  { %1958 = vmatprep.subr.mxu0 %v1957_v53 }
 0x95a   :  { %1959 = vmatpush1.msra.mxu0 %v1956_v52 }
 0x95b   :  { %2127 = vmatmul.mubr.msk.f32.vlgmr.msra.gmra.mrb[4].mxu0 %vm100_vm3, %v2379_v12 }
 0xa2e   :  { %v2024_v54 = vpop.f32.mrb[4].mxu0 }
 0xa2f   :  { %v2026_v55 = vpop.f32.mrb[5].mxu0 }
 0xa30   :  { %v2029_v56 = vadd.f32 %v2026_v55, %v2024_v54 }
 0xa32   :  { %2030 = vadd.xlane.f32.xlu0 %v2029_v56 }
 0xabf   :  { %v2031_v1 = vpop.xlane.xlu0 %2030 }
 0xac0   :  { %v2032_v58 = vadd.f32 1e-05, %v2031_v1 }
 0xac2   :  { %2182 = vrsqrt.f32 %v2032_v58 }
 0xacc   :  { %v2183_v60 = vpop.eup %2182 }
 0xacd   :  { %v2034_v61 = vmul.f32 %v2183_v60, %v2379_v12 }
 0xacf   :  { %2043 = vperm.xlu1 %2177, %v2034_v61   ;;  %v2035_v62 = vmul.f32 %v2034_v61, %v1953_v49 }
 0xad1   :  { %2037 = vrot.lane.b32.xlu0 %v2035_v62, %s2195_s2 }
 0xad3   :  { %2178 = vset.pattern.permute.xlu1 %v2198_v59 }
 0xb43   :  { %v2038_v63 = vpop.permute.xlu0 %2037 }
 0xb44   :  { %v2040_v3 = vsub.f32 %v2379_v12, %v2038_v63 }
 0xb46   :  { %2050 = vperm.xlu1 %2178, %v2040_v3  }
 0xb4e   :  { %v2044_v4 = vpop.permute.xlu1 %2043 }
 0xb4f   :  { %v2046_v5 = vmul.f32 %v2044_v4, %v1873_v29  ;;  %v2047_v6 = vmul.f32 %v2044_v4, %v1875_v46 }
 0xbc5   :  { %v2051_v7 = vpop.permute.xlu1 %2050 }
 0xbc6   :  { %v2053_v8 = vadd.f32 %v2051_v7, %v2046_v5  ;;  %v2054_v9 = vadd.f32 %v2051_v7, %v2047_v6 }
 0xbc8   :  { %v2055_v10 = vadd.f32 %v2053_v8, %v2222_v0  ;;  %v2056_v11 = vadd.f32 %v2054_v9, %v2239_v2 }
 0xbca   :  { %v2057_v13 = vmax.f32 %v2055_v10, 0.0  ;;  %v2058_v14 = vmax.f32 %v2056_v11, 0.0 }
 0xbcc   :  { %2059 = vst [vmem:[%s2527_s3] sm:$0xff] %v2057_v13  ;;  %2060 = vst [vmem:[%s2527_s3 + $0x8] sm:$0xff] %v2058_v14 }

</bundles_post_ra>
